<compile_context>
chip_gen: v7x
topology: tpu7x:2x2x1
jax: 0.10.0
libtpu: 0.0.40
codegen_flags: <defaults>
</compile_context>

<pallas_src>
import jax
import jax.numpy as jnp
from jax.experimental import pallas as pl
from jax.experimental.pallas import tpu as pltpu


def _fused_rms_mlp_kernel(idx_ref, emb_ref, scale_ref, w1_ref, b1_ref,
                          w2_ref, b2_ref, o_ref, h_ref):
    # idx_ref:   (Bt, S)      int32  token ids for this batch tile
    # emb_ref:   (V, D)       f32    embedding table (full, shared)
    # scale_ref: (S, D)       f32    RMSNorm scale (shared)
    # w1_ref:    (D, D)  b1_ref: (1, D)
    # w2_ref:    (D, tn) b2_ref: (1, tn)        current vocab tile j
    # o_ref:     (Bt, S, tn)  f32    logits tile
    # h_ref:     (Bt*S, D)    f32    scratch: post-ReLU hidden, reused across j
    j = pl.program_id(1)

    @pl.when(j == 0)
    def _compute_hidden():
        Bt, S = idx_ref.shape
        V, D = emb_ref.shape

        # ---- fused embedding gather: one-hot(idx) @ table on the MXU (exact) ----
        ids = idx_ref[...]                                            # (Bt, S) i32
        iota_v = jax.lax.broadcasted_iota(jnp.int32, (Bt, S, V), 2)
        onehot = (iota_v == ids[:, :, None]).astype(jnp.float32)      # (Bt, S, V)
        x = jnp.dot(onehot.reshape(Bt * S, V), emb_ref[...],
                    preferred_element_type=jnp.float32)               # (Bt*S, D)

        # ---- RMSNorm: per batch element over (S, D), no eps (matches torch) ----
        x3 = x.reshape(Bt, S, D)
        ssq = jnp.sum(x3 * x3, axis=2, keepdims=True)                 # (Bt, S, 1)
        ssq = jnp.sum(ssq, axis=1, keepdims=True)                     # (Bt, 1, 1)
        # ff_rms = sqrt(ssq) / sqrt(S*D)  ->  1/ff_rms = rsqrt(ssq) * sqrt(S*D)
        inv_rms = jax.lax.rsqrt(ssq) * (float(S * D) ** 0.5)
        xn = x3 * inv_rms * scale_ref[...]                            # (Bt, S, D)

        # ---- Linear -> ReLU into scratch (reused for all vocab tiles) ----
        h1 = jnp.dot(xn.reshape(Bt * S, D), w1_ref[...],
                     preferred_element_type=jnp.float32) + b1_ref[...]
        h_ref[...] = jnp.maximum(h1, 0.0)

    # ---- second Linear over the current (lane-dense) vocab tile ----
    logits = jnp.dot(h_ref[...], w2_ref[...],
                     preferred_element_type=jnp.float32) + b2_ref[...]
    Bt, S, tn = o_ref.shape
    o_ref[...] = logits.reshape(Bt, S, tn).astype(o_ref.dtype)


def _choose_batch_tile(B, S, row_budget=512):
    """Largest divisor of B whose row count Bt*S stays within a modest budget."""
    bt = 1
    for cand in range(1, B + 1):
        if B % cand == 0 and cand * S <= max(row_budget, S):
            bt = cand
    return bt


def simple_model_rms_forward(idx, embedding, scale, w1, b1, w2, b2):
    """idx: (B, S) int32 token ids. Returns logits (B, S, vocab_size)."""
    B, S = idx.shape
    V, D = embedding.shape
    assert scale.shape[0] >= S and scale.shape[1] == D
    assert w1.shape == (D, D) and b1.shape == (D,)
    assert w2.shape == (D, V) and b2.shape == (V,)

    f32 = jnp.float32

    # Lane-dense vocab: pad V up to a multiple of 128 (zeros), sliced off below.
    V_pad = ((V + 127) // 128) * 128
    pad_v = V_pad - V
    tn = 128
    for cand in (512, 256, 128):
        if V_pad % cand == 0:
            tn = cand
            break

    Bt = _choose_batch_tile(B, S)
    grid = (B // Bt, V_pad // tn)

    idx_i32 = idx.astype(jnp.int32)
    emb_f32 = embedding.astype(f32)
    scale_s = scale[:S, :].astype(f32)                       # (S, D)
    w1_f = w1.astype(f32)
    b1_2d = b1.reshape(1, D).astype(f32)
    w2_p = jnp.pad(w2.astype(f32), ((0, 0), (0, pad_v)))     # (D, V_pad)
    b2_p = jnp.pad(b2.reshape(1, V).astype(f32), ((0, 0), (0, pad_v)))  # (1, V_pad)

    grid_spec = pltpu.PrefetchScalarGridSpec(
        num_scalar_prefetch=0,
        grid=grid,
        in_specs=[
            pl.BlockSpec((Bt, S), lambda b, j: (b, 0)),      # idx (batch tile)
            pl.BlockSpec((V, D), lambda b, j: (0, 0)),       # embedding table
            pl.BlockSpec((S, D), lambda b, j: (0, 0)),       # RMSNorm scale
            pl.BlockSpec((D, D), lambda b, j: (0, 0)),       # w1
            pl.BlockSpec((1, D), lambda b, j: (0, 0)),       # b1
            pl.BlockSpec((D, tn), lambda b, j: (0, j)),      # w2 vocab tile
            pl.BlockSpec((1, tn), lambda b, j: (0, j)),      # b2 vocab tile
        ],
        out_specs=pl.BlockSpec((Bt, S, tn), lambda b, j: (b, 0, j)),
        scratch_shapes=[pltpu.VMEM((Bt * S, D), jnp.float32)],
    )

    out = pl.pallas_call(
        _fused_rms_mlp_kernel,
        out_shape=jax.ShapeDtypeStruct((B, S, V_pad), f32),
        grid_spec=grid_spec,
        compiler_params=pltpu.CompilerParams(
            dimension_semantics=("parallel", "arbitrary"),
            vmem_limit_bytes=32 * 1024 * 1024),
    )(idx_i32, emb_f32, scale_s, w1_f, b1_2d, w2_p, b2_p)

    return out[..., :V]


def reference_forward(idx, embedding, scale, w1, b1, w2, b2):
    """Pure-JAX reference mirroring the PyTorch module exactly (f32)."""
    x = jnp.take(embedding, idx, axis=0)                                  # (B, S, D)
    S = x.shape[1]
    ff_rms = jnp.sqrt(jnp.sum(x * x, axis=(1, 2))) * (x[0].size ** -0.5)  # (B,)
    raw = x / ff_rms[:, None, None]
    xn = scale[:S, :][None] * raw
    h1 = jnp.maximum(xn @ w1 + b1, 0.0)
    return h1 @ w2 + b2


if __name__ == "__main__":
    # config: vocab_size=32, d_model=32, context_window=8, batch=2
    vocab_size = 32
    d_model = 32
    context_window = 8
    batch = 2
    seq_len = context_window

    key = jax.random.PRNGKey(0)
    k_emb, k_idx, k_w1, k_b1, k_w2, k_b2 = jax.random.split(key, 6)

    embedding = jax.random.normal(k_emb, (vocab_size, d_model), dtype=jnp.float32)
    scale = jnp.ones((context_window, d_model), dtype=jnp.float32)  # RMSNorm scale init
    # Linear params stored (in, out): kernel/ref do x @ W + b (== PyTorch x @ W.T + b)
    w1 = jax.random.normal(k_w1, (d_model, d_model), dtype=jnp.float32) * 0.05
    b1 = jax.random.normal(k_b1, (d_model,), dtype=jnp.float32) * 0.05
    w2 = jax.random.normal(k_w2, (d_model, vocab_size), dtype=jnp.float32) * 0.05
    b2 = jax.random.normal(k_b2, (vocab_size,), dtype=jnp.float32) * 0.05

    idx = jax.random.randint(k_idx, (batch, seq_len), 0, vocab_size, dtype=jnp.int32)

    logits = simple_model_rms_forward(idx, embedding, scale, w1, b1, w2, b2)
    logits = jax.block_until_ready(logits)

    ref = reference_forward(idx, embedding, scale, w1, b1, w2, b2)
    assert logits.shape == (batch, seq_len, vocab_size)
    assert jnp.allclose(logits, ref, atol=1e-4, rtol=1e-4), (
        f"max abs err {jnp.max(jnp.abs(logits - ref))}")

    print("KERNEL_OK")
</pallas_src>

<mosaic_0001>
module attributes {stable_mosaic.version = 11 : i64} {
  func.func @_fused_rms_mlp_kernel(%arg0: i32, %arg1: i32, %arg2: memref<2x8xi32, #tpu.memory_space<vmem>>, %arg3: memref<32x32xf32, #tpu.memory_space<vmem>>, %arg4: memref<8x32xf32, #tpu.memory_space<vmem>>, %arg5: memref<32x32xf32, #tpu.memory_space<vmem>>, %arg6: memref<1x32xf32, #tpu.memory_space<vmem>>, %arg7: memref<32x128xf32, #tpu.memory_space<vmem>>, %arg8: memref<1x128xf32, #tpu.memory_space<vmem>>, %arg9: memref<2x8x128xf32, #tpu.memory_space<vmem>>, %arg10: memref<16x32xf32, #tpu.memory_space<vmem>>) attributes {dimension_semantics = [#tpu.dimension_semantics<parallel>, #tpu.dimension_semantics<arbitrary>], iteration_bounds = array<i64: 1, 1>, scalar_prefetch = 0 : i64, scratch_operands = 1 : i64, tpu.core_type = #tpu.core_type<tc>, window_params = [{transform_indices = @transform_0, window_bounds = array<i64: 2, 8>}, {pipeline_mode = #tpu.pipeline_mode<synchronous>, transform_indices = @transform_1, window_bounds = array<i64: 32, 32>}, {pipeline_mode = #tpu.pipeline_mode<synchronous>, transform_indices = @transform_2, window_bounds = array<i64: 8, 32>}, {pipeline_mode = #tpu.pipeline_mode<synchronous>, transform_indices = @transform_3, window_bounds = array<i64: 32, 32>}, {pipeline_mode = #tpu.pipeline_mode<synchronous>, transform_indices = @transform_4, window_bounds = array<i64: 1, 32>}, {transform_indices = @transform_5, window_bounds = array<i64: 32, 128>}, {transform_indices = @transform_6, window_bounds = array<i64: 1, 128>}, {transform_indices = @transform_7, window_bounds = array<i64: 2, 8, 128>}]} {
    %c0_i32 = arith.constant 0 : i32
    %0 = arith.cmpi eq, %arg1, %c0_i32 : i32
    %1 = arith.extui %0 : i1 to i32
    %c0_i32_0 = arith.constant 0 : i32
    %2 = arith.cmpi ne, %1, %c0_i32_0 : i32
    scf.if %2 {
      %c0_9 = arith.constant 0 : index
      %c0_10 = arith.constant 0 : index
      %11 = vector.load %arg2[%c0_9, %c0_10] : memref<2x8xi32, #tpu.memory_space<vmem>>, vector<2x8xi32>
      %12 = tpu.iota {dimensions = array<i32: 2>} : vector<2x8x32xi32>
      %13 = vector.shape_cast %11 : vector<2x8xi32> to vector<2x8x1xi32>
      %14 = vector.broadcast %13 : vector<2x8x1xi32> to vector<2x8x32xi32>
      %15 = arith.cmpi eq, %12, %14 : vector<2x8x32xi32>
      %16 = arith.extui %15 : vector<2x8x32xi1> to vector<2x8x32xi32>
      %17 = arith.sitofp %16 : vector<2x8x32xi32> to vector<2x8x32xf32>
      %18 = vector.shape_cast %17 : vector<2x8x32xf32> to vector<16x32xf32>
      %c0_11 = arith.constant 0 : index
      %c0_12 = arith.constant 0 : index
      %19 = vector.load %arg3[%c0_11, %c0_12] : memref<32x32xf32, #tpu.memory_space<vmem>>, vector<32x32xf32>
      %cst_13 = arith.constant dense<0.000000e+00> : vector<16x32xf32>
      %20 = tpu.matmul %18, %19, %cst_13 {dimension_numbers = #tpu.dot_dimension_numbers<[1], [0], [0], [1], [0, 0, 1, 1], [], []>} : vector<16x32xf32>, vector<32x32xf32>, vector<16x32xf32> -> vector<16x32xf32>
      %21 = vector.shape_cast %20 : vector<16x32xf32> to vector<2x8x32xf32>
      %22 = arith.mulf %21, %21 : vector<2x8x32xf32>
      %cst_14 = arith.constant dense<0.000000e+00> : vector<2x8xf32>
      %23 = vector.multi_reduction <add>, %22, %cst_14 [2] : vector<2x8x32xf32> to vector<2x8xf32>
      %24 = vector.shape_cast %23 : vector<2x8xf32> to vector<2x8x1xf32>
      %cst_15 = arith.constant dense<0.000000e+00> : vector<2x1xf32>
      %25 = vector.multi_reduction <add>, %24, %cst_15 [1] : vector<2x8x1xf32> to vector<2x1xf32>
      %26 = vector.shape_cast %25 : vector<2x1xf32> to vector<2x1x1xf32>
      %27 = math.rsqrt %26 : vector<2x1x1xf32>
      %cst_16 = arith.constant 1.600000e+01 : f32
      %28 = vector.broadcast %cst_16 : f32 to vector<2x1x1xf32>
      %29 = arith.mulf %27, %28 : vector<2x1x1xf32>
      %30 = vector.broadcast %29 : vector<2x1x1xf32> to vector<2x8x32xf32>
      %31 = arith.mulf %21, %30 : vector<2x8x32xf32>
      %c0_17 = arith.constant 0 : index
      %c0_18 = arith.constant 0 : index
      %32 = vector.load %arg4[%c0_17, %c0_18] : memref<8x32xf32, #tpu.memory_space<vmem>>, vector<8x32xf32>
      %33 = vector.shape_cast %32 : vector<8x32xf32> to vector<1x8x32xf32>
      %34 = vector.broadcast %33 : vector<1x8x32xf32> to vector<2x8x32xf32>
      %35 = arith.mulf %31, %34 : vector<2x8x32xf32>
      %36 = vector.shape_cast %35 : vector<2x8x32xf32> to vector<16x32xf32>
      %c0_19 = arith.constant 0 : index
      %c0_20 = arith.constant 0 : index
      %37 = vector.load %arg5[%c0_19, %c0_20] : memref<32x32xf32, #tpu.memory_space<vmem>>, vector<32x32xf32>
      %cst_21 = arith.constant dense<0.000000e+00> : vector<16x32xf32>
      %38 = tpu.matmul %36, %37, %cst_21 {dimension_numbers = #tpu.dot_dimension_numbers<[1], [0], [0], [1], [0, 0, 1, 1], [], []>} : vector<16x32xf32>, vector<32x32xf32>, vector<16x32xf32> -> vector<16x32xf32>
      %c0_22 = arith.constant 0 : index
      %c0_23 = arith.constant 0 : index
      %39 = vector.load %arg6[%c0_22, %c0_23] : memref<1x32xf32, #tpu.memory_space<vmem>>, vector<1x32xf32>
      %40 = vector.broadcast %39 : vector<1x32xf32> to vector<16x32xf32>
      %41 = arith.addf %38, %40 : vector<16x32xf32>
      %cst_24 = arith.constant 0.000000e+00 : f32
      %42 = vector.broadcast %cst_24 : f32 to vector<16x32xf32>
      %43 = arith.maximumf %41, %42 : vector<16x32xf32>
      %c0_25 = arith.constant 0 : index
      %c0_26 = arith.constant 0 : index
      %44 = vector.load %arg10[%c0_25, %c0_26] : memref<16x32xf32, #tpu.memory_space<vmem>>, vector<16x32xf32>
      tpu.vector_store %arg10[%c0_25, %c0_26], %43 {strides = array<i32>} : memref<16x32xf32, #tpu.memory_space<vmem>>, vector<16x32xf32>,
    } else {
    }
    %c0 = arith.constant 0 : index
    %c0_1 = arith.constant 0 : index
    %3 = vector.load %arg10[%c0, %c0_1] : memref<16x32xf32, #tpu.memory_space<vmem>>, vector<16x32xf32>
    %c0_2 = arith.constant 0 : index
    %c0_3 = arith.constant 0 : index
    %4 = vector.load %arg7[%c0_2, %c0_3] : memref<32x128xf32, #tpu.memory_space<vmem>>, vector<32x128xf32>
    %cst = arith.constant dense<0.000000e+00> : vector<16x128xf32>
    %5 = tpu.matmul %3, %4, %cst {dimension_numbers = #tpu.dot_dimension_numbers<[1], [0], [0], [1], [0, 0, 1, 1], [], []>} : vector<16x32xf32>, vector<32x128xf32>, vector<16x128xf32> -> vector<16x128xf32>
    %c0_4 = arith.constant 0 : index
    %c0_5 = arith.constant 0 : index
    %6 = vector.load %arg8[%c0_4, %c0_5] : memref<1x128xf32, #tpu.memory_space<vmem>>, vector<1x128xf32>
    %7 = vector.broadcast %6 : vector<1x128xf32> to vector<16x128xf32>
    %8 = arith.addf %5, %7 : vector<16x128xf32>
    %9 = vector.shape_cast %8 : vector<16x128xf32> to vector<2x8x128xf32>
    %c0_6 = arith.constant 0 : index
    %c0_7 = arith.constant 0 : index
    %c0_8 = arith.constant 0 : index
    %10 = vector.load %arg9[%c0_6, %c0_7, %c0_8] : memref<2x8x128xf32, #tpu.memory_space<vmem>>, vector<2x8x128xf32>
    tpu.vector_store %arg9[%c0_6, %c0_7, %c0_8], %9 {strides = array<i32>} : memref<2x8x128xf32, #tpu.memory_space<vmem>>, vector<2x8x128xf32>,
    return
  }
  func.func @transform_0(%arg0: i32, %arg1: i32) -> (i32, i32) {
    %c0_i32 = arith.constant 0 : i32
    %c0_i32_0 = arith.constant 0 : i32
    return %arg0, %c0_i32 : i32, i32
  }
  func.func @transform_1(%arg0: i32, %arg1: i32) -> (i32, i32) {
    %c0_i32 = arith.constant 0 : i32
    %c0_i32_0 = arith.constant 0 : i32
    %c0_i32_1 = arith.constant 0 : i32
    return %c0_i32, %c0_i32_0 : i32, i32
  }
  func.func @transform_2(%arg0: i32, %arg1: i32) -> (i32, i32) {
    %c0_i32 = arith.constant 0 : i32
    %c0_i32_0 = arith.constant 0 : i32
    %c0_i32_1 = arith.constant 0 : i32
    return %c0_i32, %c0_i32_0 : i32, i32
  }
  func.func @transform_3(%arg0: i32, %arg1: i32) -> (i32, i32) {
    %c0_i32 = arith.constant 0 : i32
    %c0_i32_0 = arith.constant 0 : i32
    %c0_i32_1 = arith.constant 0 : i32
    return %c0_i32, %c0_i32_0 : i32, i32
  }
  func.func @transform_4(%arg0: i32, %arg1: i32) -> (i32, i32) {
    %c0_i32 = arith.constant 0 : i32
    %c0_i32_0 = arith.constant 0 : i32
    %c0_i32_1 = arith.constant 0 : i32
    return %c0_i32, %c0_i32_0 : i32, i32
  }
  func.func @transform_5(%arg0: i32, %arg1: i32) -> (i32, i32) {
    %c0_i32 = arith.constant 0 : i32
    %c0_i32_0 = arith.constant 0 : i32
    return %c0_i32, %arg1 : i32, i32
  }
  func.func @transform_6(%arg0: i32, %arg1: i32) -> (i32, i32) {
    %c0_i32 = arith.constant 0 : i32
    %c0_i32_0 = arith.constant 0 : i32
    return %c0_i32, %arg1 : i32, i32
  }
  func.func @transform_7(%arg0: i32, %arg1: i32) -> (i32, i32, i32) {
    %c0_i32 = arith.constant 0 : i32
    %c0_i32_0 = arith.constant 0 : i32
    return %arg0, %c0_i32, %arg1 : i32, i32, i32
  }
}

</mosaic_0001>

<bundles_post_ra>
// kernel: tpu_custom_call.1
= control target key start
LH: loop header
LB: loop body
LE: loop exit
PB: predicated region body
PF: predicated region fallthrough
CT: control target
= control target key end

     0   :  { %12 = vsyncpa [#allocation4], 0  ;;  %s832_s0 = inlined_call_operand.hbm [shape: s32[2,8], index: 0, kind: input, shape index: {}]   ;;  %s833_s1 = inlined_call_operand.hbm [shape: f32[32,32], index: 1, kind: input, shape index: {}]   ;;  %s834_s2 = inlined_call_operand.hbm [shape: f32[8,32], index: 2, kind: input, shape index: {}]   ;;  %s835_s3 = inlined_call_operand.hbm [shape: f32[32,32], index: 3, kind: input, shape index: {}]   ;;  %s836_s4 = inlined_call_operand.vmem [shape: f32[1,32], index: 4, kind: input, shape index: {}]   ;;  %s837_s5 = inlined_call_operand.hbm [shape: f32[32,128], index: 5, kind: input, shape index: {}]   ;;  %s838_s6 = inlined_call_operand.vmem [shape: f32[1,128], index: 6, kind: input, shape index: {}]   ;;  %s839_s7 = inlined_call_operand.hbm [shape: f32[2,8,128], index: 7, kind: output, shape index: {}]  }
   0x1   :  { %13 = vsyncpa [#allocation7], 0 }
   0x2   :  { %14 = vsyncpa [#allocation10], 0 }
   0x3   :  { %15 = vsyncpa [#allocation5], 0  ;;  %s683_s24 = smov [#allocation6]   ;;  %s543_s28 = scalar_lea.hbm %s833_s1, 512 }
   0x4   :  { %s31_s25 = sshll.u32 %s683_s24, 4  ;;  %p544_p0 = scmp.ne.s32.totalorder %s833_s1, %s543_s28  ;;  %s32_s25 = int_to_ptr.vmem [resolvable:$true] %s31_s25 }
   0x5   :  { %p547_p1 = scmp.lt.u32.totalorder %s543_s28, %s833_s1 }
   0x7   :  { %p549_p2 = pnand %p547_p1, %p544_p0 }
   0x9   :  { %552 = shalt.err (!%p549_p2)
}
   0xa   :  { %s553_s10 = scalar_lea.vmem %s32_s25, 512  ;;  %p558_p4 = scmp.lt.s32.totalorder %s32_s25, %s32_s25 }
   0xb   :  { %p554_p3 = scmp.ne.s32.totalorder %s32_s25, %s553_s10  ;;  %p559_p5 = scmp.lt.s32.totalorder %s553_s10, %s553_s10 }
   0xd   :  { %p560_p6 = por %p559_p5, %p558_p4 }
   0xf   :  { %p561_p7 = pnand %p560_p6, %p554_p3 }
  0x11   :  { %564 = shalt.err (!%p561_p7)
}
  0x12   :  { %s684_s11 = smov 128   ;;  %s685_s12 = smov 8  }
  0x13   :  { %37 = dma.hbm_to_vmem [thread:$0]  %s833_s1, 512, %s32_s25, [#allocation7], %s684_s11, %s684_s11, %s685_s12  }
  0x14   :  { %s686_s15 = smov [#allocation9]   ;;  %s687_s17 = smov [#allocation3]  }
  0x15   :  { %s53_s16 = sshll.u32 %s686_s15, 4  ;;  %s22_s18 = sshll.u32 %s687_s17, 4  ;;  %s54_s16 = int_to_ptr.vmem [resolvable:$true] %s53_s16  ;;  %s23_s18 = int_to_ptr.vmem [resolvable:$true] %s22_s18 }
  0x16   :  { %s565_s21 = scalar_lea.hbm %s835_s3, 512 }
  0x17   :  { %p566_p8 = scmp.ne.s32.totalorder %s835_s3, %s565_s21  ;;  %p569_p9 = scmp.lt.u32.totalorder %s565_s21, %s835_s3 }
  0x19   :  { %p571_p10 = pnand %p569_p9, %p566_p8 }
  0x1b   :  { %574 = shalt.err (!%p571_p10)
}
  0x1c   :  { %s575_s1 = scalar_lea.vmem %s54_s16, 512  ;;  %p580_p12 = scmp.lt.s32.totalorder %s54_s16, %s54_s16 }
  0x1d   :  { %p576_p11 = scmp.ne.s32.totalorder %s54_s16, %s575_s1  ;;  %p581_p13 = scmp.lt.s32.totalorder %s575_s1, %s575_s1 }
  0x1f   :  { %p582_p0 = por %p581_p13, %p580_p12 }
  0x21   :  { %p583_p1 = pnand %p582_p0, %p576_p11 }
  0x23   :  { %586 = shalt.err (!%p583_p1)
}
  0x24   :  { %59 = dma.hbm_to_vmem [thread:$0]  %s835_s3, 512, %s54_s16, [#allocation10], %s684_s11, %s684_s11, %s685_s12  }
  0x25   :  { %s587_s30 = scalar_lea.hbm %s832_s0, 32 }
  0x26   :  { %p588_p2 = scmp.ne.s32.totalorder %s832_s0, %s587_s30  ;;  %p591_p3 = scmp.lt.u32.totalorder %s587_s30, %s832_s0 }
  0x28   :  { %p593_p4 = pnand %p591_p3, %p588_p2 }
  0x2a   :  { %596 = shalt.err (!%p593_p4)
}
  0x2b   :  { %s597_s14 = scalar_lea.vmem %s23_s18, 32  ;;  %p602_p6 = scmp.lt.s32.totalorder %s23_s18, %s23_s18 }
  0x2c   :  { %p598_p5 = scmp.ne.s32.totalorder %s23_s18, %s597_s14  ;;  %p603_p7 = scmp.lt.s32.totalorder %s597_s14, %s597_s14 }
  0x2e   :  { %p604_p8 = por %p603_p7, %p602_p6 }
  0x30   :  { %p605_p9 = pnand %p604_p8, %p598_p5 }
  0x32   :  { %608 = shalt.err (!%p605_p9)
}
  0x33   :  { %25 = dma.hbm_to_vmem [thread:$0]  %s832_s0, 32, %s23_s18, [#allocation4]  }
  0x34   :  { %s688_s16 = smov [#allocation8]   ;;  %s689_s19 = smov [#allocation11]  }
  0x35   :  { %s44_s17 = sshll.u32 %s688_s16, 4  ;;  %s67_s20 = sshll.u32 %s689_s19, 4  ;;  %s45_s17 = int_to_ptr.vmem [resolvable:$true] %s44_s17  ;;  %s68_s20 = int_to_ptr.vmem [resolvable:$true] %s67_s20 }
  0x36   :  { %s609_s23 = scalar_lea.hbm %s834_s2, 128 }
  0x37   :  { %p610_p10 = scmp.ne.s32.totalorder %s834_s2, %s609_s23  ;;  %p613_p11 = scmp.lt.u32.totalorder %s609_s23, %s834_s2 }
  0x39   :  { %p615_p12 = pnand %p613_p11, %p610_p10 }
  0x3b   :  { %618 = shalt.err (!%p615_p12)
}
  0x3c   :  { %s619_s0 = scalar_lea.vmem %s45_s17, 128  ;;  %p624_p0 = scmp.lt.s32.totalorder %s45_s17, %s45_s17 }
  0x3d   :  { %p620_p13 = scmp.ne.s32.totalorder %s45_s17, %s619_s0  ;;  %p625_p1 = scmp.lt.s32.totalorder %s619_s0, %s619_s0 }
  0x3f   :  { %p626_p2 = por %p625_p1, %p624_p0 }
  0x41   :  { %p627_p3 = pnand %p626_p2, %p620_p13 }
  0x43   :  { %630 = shalt.err (!%p627_p3)
}
  0x44   :  { %47 = dma.hbm_to_vmem [thread:$0]  %s834_s2, 128, %s45_s17, [#allocation7]  }
  0x45   :  { %s631_s30 = scalar_lea.hbm %s837_s5, 512 }
  0x46   :  { %p632_p4 = scmp.ne.s32.totalorder %s837_s5, %s631_s30  ;;  %p635_p5 = scmp.lt.u32.totalorder %s631_s30, %s837_s5 }
  0x48   :  { %p637_p6 = pnand %p635_p5, %p632_p4 }
  0x4a   :  { %640 = shalt.err (!%p637_p6)
}
  0x4b   :  { %s641_s14 = scalar_lea.vmem %s68_s20, 512  ;;  %p646_p8 = scmp.lt.s32.totalorder %s68_s20, %s68_s20 }
  0x4c   :  { %p642_p7 = scmp.ne.s32.totalorder %s68_s20, %s641_s14  ;;  %p647_p9 = scmp.lt.s32.totalorder %s641_s14, %s641_s14 }
  0x4e   :  { %p648_p10 = por %p647_p9, %p646_p8 }
  0x50   :  { %p649_p11 = pnand %p648_p10, %p642_p7 }
  0x52   :  { %652 = shalt.err (!%p649_p11)
}
  0x53   :  { %73 = dma.hbm_to_vmem [thread:$0]  %s837_s5, 512, %s68_s20, [#allocation10], %s684_s11, %s684_s11, %s685_s12  }
  0x54   :  { %675 = dma.done.wait [#allocation4], 32  }
  0x55   :  { %676 = vsyncadd [#allocation4], 4294967264 }
  0x56   :  { %677 = dma.done.wait [#allocation7], 640  }
  0x57   :  { %678 = vsyncadd [#allocation7], 4294966656 }
  0x58   :  { %679 = dma.done.wait [#allocation10], 1024  }
  0x59   :  { %680 = vsyncadd [#allocation10], 4294966272  ;;  %v96_v0 = vlaneseq  ;;  %v95_v4 = vld [vmem:[#allocation3] sm:$0x3]  ;;  %v118_v5 = vld [vmem:[#allocation6] sm:$0xff]  ;;  %vm122_vm0 = vcmask 261120  }
  0x5a   :  { %v119_v6 = vld [vmem:[#allocation6 + $0x8] sm:$0xff]  ;;  %v120_v9 = vld [vmem:[#allocation6 + $0x10] sm:$0xff]  ;;  %v121_v10 = vld [vmem:[#allocation6 + $0x18] sm:$0xff]  ;;  %v690_v15 = vmov 0.0  }
  0x5b   :  { %v99_v1 = vshrl.u32 %v96_v0, 7  ;;  %v506_v8 = vpack.c.bf16 %v119_v6, %v118_v5  ;;  %v510_v11 = vpack.c.bf16 %v121_v10, %v120_v9  ;;  %v97_v13 = vand.u32 127, %v96_v0  ;;  %v233_v25 = vld [vmem:[#allocation9] sm:$0xff]  ;;  %v234_v26 = vld [vmem:[#allocation9 + $0x8] sm:$0xff]  ;;  %v235_v27 = vld [vmem:[#allocation9 + $0x10] sm:$0xff] }
  0x5c   :  { %v514_v28 = vpack.c.bf16 %v234_v26, %v233_v25  ;;  %v236_v29 = vld [vmem:[#allocation9 + $0x18] sm:$0xff]  ;;  %v331_v54 = vld [vmem:[#allocation11] sm:$0xff]  ;;  %v332_v55 = vld [vmem:[#allocation11 + $0x8] sm:$0xff] }
  0x5d   :  { %v100_v2 = vsub.s32 0, %v99_v1  ;;  %v107_v3 = vsub.s32 1, %v99_v1  ;;  %507 = vmatprep.subr.bf16.mxu0 %v506_v8  ;;  %v518_v30 = vpack.c.bf16 %v236_v29, %v235_v27  ;;  %v230_v47 = vld [vmem:[#allocation8] sm:$0xff]  ;;  %v522_v56 = vpack.c.bf16 %v332_v55, %v331_v54  ;;  %v333_v57 = vld [vmem:[#allocation11 + $0x10] sm:$0xff]  ;;  %v449_v60 = vld [vmem:[%s836_s4] ss:$0 sm:$0xff] }
  0x5e   :  { %509 = vmatpush3.bf16.msra.mxu0 %v506_v8  ;;  %515 = vmatprep.subr.bf16.mxu1 %v514_v28  ;;  %v334_v58 = vld [vmem:[#allocation11 + $0x18] sm:$0xff]  ;;  %v452_v5 = vld [vmem:[%s838_s6] ss:$0 sm:$0xff]  ;;  %s691_s4 = smov [#allocation12]  }
  0x5f   :  { %v101_v7 = vrot.slane %v95_v4, %v100_v2  ;;  %v108_v12 = vrot.slane %v95_v4, %v107_v3  ;;  %511 = vmatprep.subr.bf16.mxu0 %v510_v11  ;;  %517 = vmatpush3.bf16.msra.mxu1 %v514_v28  ;;  %v526_v59 = vpack.c.bf16 %v334_v58, %v333_v57  ;;  %s431_s19 = sshll.u32 %s691_s4, 4  ;;  %s432_s19 = int_to_ptr.vmem [resolvable:$true] %s431_s19 }
  0x60   :  { %519 = vmatprep.subr.bf16.mxu1 %v518_v30  ;;  %s653_s20 = scalar_lea.vmem %s432_s19, 256  ;;  %p658_p13 = scmp.lt.s32.totalorder %s432_s19, %s432_s19 }
  0x61   :  { %103 = vbcast.lane.b32.xlu0 %v101_v7, 256  ;;  %p654_p12 = scmp.ne.s32.totalorder %s432_s19, %s653_s20  ;;  %p659_p0 = scmp.lt.s32.totalorder %s653_s20, %s653_s20 }
  0x62   :  { %513 = vmatpush3.bf16.msra.mxu0 %v510_v11 }
  0x63   :  { %521 = vmatpush3.bf16.msra.mxu1 %v518_v30  ;;  %523 = vmatprep.subr.bf16.mxu0 %v522_v56  ;;  %p660_p1 = por %p659_p0, %p658_p13 }
  0x65   :  { %110 = vbcast.lane.b32.xlu0 %v108_v12, 256  ;;  %p661_p2 = pnand %p660_p1, %p654_p12 }
  0xd3   :  { %v104_v14 = vpop.permute.xlu0 %103 }
  0xd4   :  { %vm112_vm1 = vcmp.eq.s32.totalorder %v97_v13, %v104_v14 }
  0xd5   :  { %v445_v16 = vsel %vm112_vm1, 1.0, %v690_v15 }
  0xd6   :  { %481 = vmatprep.mubr.msk.f32.mxu0 %vm122_vm0, %v445_v16 }
  0xd7   :  { %v111_v17 = vpop.permute.xlu0 %110 }
  0xd8   :  { %vm113_vm2 = vcmp.eq.s32.totalorder %v97_v13, %v111_v17 }
  0xd9   :  { %v446_v18 = vsel %vm113_vm2, 1.0, %v690_v15 }
  0xda   :  { %482 = vmatmul.mubr.msk.f32.vlgmr.msra.gmra.mrb[0].mxu0 %vm122_vm0, %v446_v18 }
  0xdb   :  { %525 = vmatpush3.bf16.msra.mxu0 %v522_v56 }
  0xdc   :  { %527 = vmatprep.subr.bf16.mxu0 %v526_v59 }
  0xdf   :  { %529 = vmatpush3.bf16.msra.mxu0 %v526_v59 }
 0x1ad   :  { %v483_v19 = vpop.f32.mrb[0].mxu0 }
 0x1ae   :  { %v195_v20 = vpop.f32.mrb[1].mxu0  ;;  %v205_v22 = vmul.f32 %v483_v19, %v483_v19 }
 0x1af   :  { %v204_v21 = vmul.f32 %v195_v20, %v195_v20 }
 0x1b0   :  { %v209_v24 = vsel %vm122_vm0, %v205_v22, 0.0 }
 0x1b1   :  { %v206_v23 = vsel %vm122_vm0, %v204_v21, 0.0 }
 0x1b2   :  { %207 = vadd.xlane.f32.xlu1 %v206_v23 }
 0x1b6   :  { %210 = vadd.xlane.f32.xlu1 %v209_v24 }
 0x23f   :  { %v208_v31 = vpop.xlane.xlu1 %207 }
 0x240   :  { %v212_v32 = vrot.slane %v208_v31, 4 }
 0x242   :  { %v213_v33 = vadd.f32 %v212_v32, %v208_v31 }
 0x243   :  { %v211_v34 = vpop.xlane.xlu1 %210 }
 0x244   :  { %v214_v35 = vrot.slane %v213_v33, 2  ;;  %v218_v36 = vrot.slane %v211_v34, 4 }
 0x246   :  { %v215_v37 = vadd.f32 %v214_v35, %v213_v33  ;;  %v219_v38 = vadd.f32 %v218_v36, %v211_v34 }
 0x248   :  { %v216_v39 = vrot.slane %v215_v37, 1  ;;  %v220_v40 = vrot.slane %v219_v38, 2 }
 0x24a   :  { %v217_v41 = vadd.f32 %v216_v39, %v215_v37  ;;  %v221_v42 = vadd.f32 %v220_v40, %v219_v38 }
 0x24c   :  { %539 = vrsqrt.f32 %v217_v41  ;;  %v222_v43 = vrot.slane %v221_v42, 1 }
 0x24e   :  { %v223_v44 = vadd.f32 %v222_v43, %v221_v42 }
 0x250   :  { %541 = vrsqrt.f32 %v223_v44 }
 0x256   :  { %v540_v45 = vpop.eup %539 }
 0x257   :  { %v226_v46 = vmul.f32 16.0, %v540_v45 }
 0x259   :  { %v228_v48 = vmul.f32 %v226_v46, %v195_v20 }
 0x25a   :  { %v542_v49 = vpop.eup %541 }
 0x25b   :  { %v227_v50 = vmul.f32 16.0, %v542_v49  ;;  %v231_v51 = vmul.f32 %v230_v47, %v228_v48 }
 0x25d   :  { %v229_v52 = vmul.f32 %v483_v19, %v227_v50  ;;  %492 = vmatprep.mubr.msk.f32.mxu1 %vm122_vm0, %v231_v51 }
 0x25f   :  { %v232_v53 = vmul.f32 %v230_v47, %v229_v52 }
 0x261   :  { %493 = vmatmul.mubr.msk.f32.vlgmr.msra.gmra.mrb[0].mxu1 %vm122_vm0, %v232_v53 }
 0x334   :  { %v494_v61 = vpop.f32.mrb[0].mxu1 }
 0x335   :  { %v322_v62 = vadd.f32 %v494_v61, %v449_v60  ;;  %v316_v63 = vpop.f32.mrb[1].mxu1 }
 0x336   :  { %v317_v0 = vadd.f32 %v449_v60, %v316_v63 }
 0x337   :  { %v326_v1 = vmax.f32 %v322_v62, 0.0 }
 0x338   :  { %v325_v2 = vmax.f32 %v317_v0, 0.0 }
 0x339   :  { %328 = vst.msk [vmem:[#allocation2 + $0x8] sm:$0xff] %vm122_vm0, %v326_v1 }
 0x33a   :  { %327 = vst.msk [vmem:[#allocation2] sm:$0xff] %vm122_vm0, %v325_v2 }
 0x340   :  { %v330_v4 = vld [vmem:[#allocation2 + $0x8] sm:$0xff] }
 0x341   :  { %v329_v3 = vld [vmem:[#allocation2] sm:$0xff] }
 0x342   :  { %503 = vmatprep.mubr.msk.f32.mxu0 %vm122_vm0, %v329_v3 }
 0x343   :  { %504 = vmatmul.mubr.msk.f32.vlgmr.msra.gmra.mrb[2].mxu0 %vm122_vm0, %v330_v4 }
 0x416   :  { %v505_v6 = vpop.f32.mrb[2].mxu0 }
 0x417   :  { %v421_v7 = vadd.f32 %v505_v6, %v452_v5  ;;  %v415_v8 = vpop.f32.mrb[3].mxu0 }
 0x418   :  { %v416_v9 = vadd.f32 %v452_v5, %v415_v8 }
 0x419   :  { %425 = vst [vmem:[#allocation12 + $0x8] sm:$0xff] %v421_v7 }
 0x41a   :  { %424 = vst [vmem:[#allocation12] sm:$0xff] %v416_v9 }
 0x41b   :  { %664 = shalt.err (!%p661_p2)
}
 0x41c   :  { %s665_s6 = scalar_lea.hbm %s839_s7, 256 }
 0x41d   :  { %p666_p3 = scmp.ne.s32.totalorder %s839_s7, %s665_s6  ;;  %p669_p4 = scmp.lt.u32.totalorder %s665_s6, %s839_s7 }
 0x41f   :  { %p671_p5 = pnand %p669_p4, %p666_p3 }
 0x421   :  { %674 = shalt.err (!%p671_p5)
}
 0x422   :  { %437 = dma.vmem_to_hbm [thread:$0]  %s432_s19, 256, %s839_s7, [#allocation5], %s684_s11, %s684_s11, %s685_s12  }
 0x423   :  { %681 = dma.done.wait [#allocation5], 256  }
 0x424   :  { %682 = vsyncadd [#allocation5], 4294967040 }
 0x425   :  { %441 = vsyncpa [#allocation4], 1 }
 0x426   :  { %442 = vsyncpa [#allocation7], 1 }
 0x427   :  { %443 = vsyncpa [#allocation10], 1 }
 0x428   :  { %444 = vsyncpa [#allocation5], 1 }

</bundles_post_ra>
